<compile_context>
chip_gen: v7x
topology: tpu7x:2x2x1
jax: 0.10.0
libtpu: 0.0.40
codegen_flags: <defaults>
</compile_context>

<pallas_src>
import jax
import jax.numpy as jnp
from jax.experimental import pallas as pl
from jax.experimental.pallas import tpu as pltpu


_M_TARGET_ROWS = 1024  # target matmul M rows (TB * L) per grid step


def _round_up(v, m):
    return -(-v // m) * m


def _fused_conv_kernel(x_ref, w_ref, b_ref, m_ref, o_ref):
    # x_ref: (TB, L_pad, E) f32   raw activations, time zero-padded by ks_max-1
    # w_ref: (ks_max, E, C_pad) bf16  packed per-tap conv weights
    # b_ref: (1, C_pad)     f32   packed biases (zero on padded channels)
    # m_ref: (L, C_pad)     f32   1.0 where time-step t is valid for the channel
    # o_ref: (TB, C_pad)    f32   ReLU + time-max-pooled conv output
    TB, L_pad, E = x_ref.shape
    ks_max, _, C = w_ref.shape
    L = m_ref.shape[0]

    x = x_ref[...]                                   # single f32 load of the tile
    acc = None
    for k in range(ks_max):                          # static unroll over conv taps
        # shifted time window; cast to bf16 only here (MXU-native inputs)
        xk = x[:, k:k + L, :].reshape(TB * L, E).astype(jnp.bfloat16)
        p = jnp.dot(xk, w_ref[k], preferred_element_type=jnp.float32)
        acc = p if acc is None else acc + p          # f32 accumulation

    y = jnp.maximum(acc + b_ref[...], 0.0)           # bias + ReLU (f32 VPU)
    y = y.reshape(TB, L, C) * m_ref[...][None, :, :]  # mask invalid taps (>=0 -> exact)
    o_ref[...] = jnp.max(y, axis=1)                  # max_pool1d over time


def _pack_params(params1, params2, ks_max, C_pad, L):
    """Pack every (branch, kernel_size) conv into one per-tap weight + bias + mask."""
    w_cols, b_cols, ks_per_chan = [], [], []
    for (w, b) in list(params1) + list(params2):
        ks, E, C = w.shape
        w_pad = jnp.pad(w, ((0, ks_max - ks), (0, 0), (0, 0)))   # (ks_max, E, C)
        w_cols.append(w_pad)
        b_cols.append(b.reshape(C))
        ks_per_chan.append(jnp.full((C,), ks, jnp.int32))
    W = jnp.concatenate(w_cols, axis=2)                          # (ks_max, E, C_total)
    bvec = jnp.concatenate(b_cols)                               # (C_total,)
    ksc = jnp.concatenate(ks_per_chan)                           # (C_total,)
    C_total = W.shape[2]
    W = jnp.pad(W, ((0, 0), (0, 0), (0, C_pad - C_total)))
    bvec = jnp.pad(bvec, (0, C_pad - C_total))
    ksc = jnp.pad(ksc, (0, C_pad - C_total), constant_values=ks_max)
    # validity mask: position t is valid for channel c iff t <= L - ks(c)
    t = jnp.arange(L, dtype=jnp.int32)[:, None]
    mask = (t <= (L - ksc)[None, :]).astype(jnp.float32)         # (L, C_pad)
    return W, bvec.reshape(1, C_pad), mask, C_total


def cnn_model_forward(s1, s2, params1, params2):
    """Pallas equivalent of CNNModel.forward.

    s1, s2: (B, L, E) f32.  params*: list of (w (ks,E,C), b (1,C)) per kernel size.
    Returns (s1_repr, s2_repr), each (B, C * len(kernel_sizes)).
    """
    B, L, E = s1.shape
    kernel_sizes = [int(w.shape[0]) for (w, _) in params1]
    ks_max = max(kernel_sizes)
    assert L >= ks_max, "sequence length must cover the largest kernel size"
    C = int(params1[0][0].shape[2])
    # branch-2 packing assumes identical (kernel_sizes, kernel_num) structure
    assert [int(w.shape[0]) for (w, _) in params2] == kernel_sizes
    assert all(int(w.shape[2]) == C for (w, _) in list(params1) + list(params2))

    n1 = len(params1) * C                       # channels of branch 1
    C_total_exp = n1 + len(params2) * C
    C_pad = max(128, _round_up(C_total_exp, 128))        # lane-dense output

    W, bias, mask, C_total = _pack_params(params1, params2, ks_max, C_pad, L)
    W_bf = W.astype(jnp.bfloat16)                         # tiny (~32 KiB) one-time cast

    # ---- batch tiling: big-M blocks, no artificial zero-padded grid blocks ----
    rows = 2 * B                                          # both branches stacked
    rows8 = _round_up(rows, 8)
    TB_target = max(8, _round_up(max(1, _M_TARGET_ROWS // L), 8))
    if rows8 <= TB_target:
        TB, n_blocks = rows8, 1                           # single block, no padded grid step
    else:
        n_blocks = -(-rows // TB_target)
        TB = _round_up(-(-rows // n_blocks), 8)           # balance real rows across blocks
    B_pad = n_blocks * TB

    # Stack both branches along batch; pad batch rows to B_pad and time by
    # ks_max-1 zeros so every shifted conv window is in-bounds in-kernel.
    L_pad = L + ks_max - 1
    x = jnp.concatenate([s1, s2], axis=0)                 # (2B, L, E) f32
    x = jnp.pad(x, ((0, B_pad - rows), (0, ks_max - 1), (0, 0)))   # (B_pad, L_pad, E)

    cost = pl.CostEstimate(
        flops=2 * B_pad * L * ks_max * E * C_pad,
        transcendentals=0,
        bytes_accessed=int(x.size) * 4 + int(W_bf.size) * 2
                       + int(bias.size) * 4 + int(mask.size) * 4
                       + B_pad * C_pad * 4)

    out = pl.pallas_call(
        _fused_conv_kernel,
        out_shape=jax.ShapeDtypeStruct((B_pad, C_pad), jnp.float32),
        grid=(n_blocks,),
        in_specs=[
            pl.BlockSpec((TB, L_pad, E), lambda i: (i, 0, 0)),
            # grid-invariant operands: constant index maps -> fetched once
            pl.BlockSpec((ks_max, E, C_pad), lambda i: (0, 0, 0)),
            pl.BlockSpec((1, C_pad), lambda i: (0, 0)),
            pl.BlockSpec((L, C_pad), lambda i: (0, 0)),
        ],
        out_specs=pl.BlockSpec((TB, C_pad), lambda i: (i, 0)),
        compiler_params=pltpu.CompilerParams(
            dimension_semantics=("parallel",)),
        cost_estimate=cost,
    )(x, W_bf, bias, mask)

    # Branch 1 rows use the first n1 channels; branch 2 rows use the rest.
    s1_repr = out[:B, :n1]
    s2_repr = out[B:2 * B, n1:C_total]
    return s1_repr, s2_repr


# ---------------------------------------------------------------------------
# pure-JAX reference (correctness check of the fused kernel)
def _ref_branch(x, w, b):
    ks, _, C = w.shape
    L_out = x.shape[1] - ks + 1
    acc = jnp.zeros((x.shape[0], L_out, C), jnp.float32)
    for k in range(ks):
        acc += jnp.einsum('ble,ec->blc', x[:, k:k + L_out, :], w[k])
    acc = jnp.maximum(acc + b.reshape(1, 1, C), 0.0)
    return jnp.max(acc, axis=1)


def _make_params(key, kernel_sizes, embedding_dim, kernel_num):
    params = []
    for i, ks in enumerate(kernel_sizes):
        kw, kb = jax.random.split(jax.random.fold_in(key, i))
        # torch conv weight is (C_out, 1, ks, E); we store (ks, E, C_out)
        w = 0.1 * jax.random.normal(kw, (ks, embedding_dim, kernel_num),
                                    dtype=jnp.float32)
        b = 0.1 * jax.random.normal(kb, (1, kernel_num), dtype=jnp.float32)
        params.append((w, b))
    return params


if __name__ == "__main__":
    # CNNModel(embedding_dim=32, kernel_num=8, kernel_sizes=[2,3,4], dropout=0.5)
    embedding_dim = 32
    kernel_num = 8
    kernel_sizes = [2, 3, 4]
    batch, seq_len = 2, 16

    root = jax.random.PRNGKey(0)
    k_s1, k_s2, k_p1, k_p2 = jax.random.split(root, 4)

    s1 = jax.random.normal(k_s1, (batch, seq_len, embedding_dim), jnp.float32)
    s2 = jax.random.normal(k_s2, (batch, seq_len, embedding_dim), jnp.float32)

    params1 = _make_params(k_p1, kernel_sizes, embedding_dim, kernel_num)
    params2 = _make_params(k_p2, kernel_sizes, embedding_dim, kernel_num)

    s1_repr, s2_repr = jax.block_until_ready(
        cnn_model_forward(s1, s2, params1, params2))

    assert s1_repr.shape == (batch, kernel_num * len(kernel_sizes))
    assert s2_repr.shape == (batch, kernel_num * len(kernel_sizes))

    # (1) tight check: reference with the same bf16 input quantization
    def _q(a):
        return a.astype(jnp.bfloat16).astype(jnp.float32)
    ref1_q = jnp.concatenate([_ref_branch(_q(s1), _q(w), b) for (w, b) in params1], 1)
    ref2_q = jnp.concatenate([_ref_branch(_q(s2), _q(w), b) for (w, b) in params2], 1)
    assert jnp.allclose(s1_repr, ref1_q, atol=1e-3), jnp.abs(s1_repr - ref1_q).max()
    assert jnp.allclose(s2_repr, ref2_q, atol=1e-3), jnp.abs(s2_repr - ref2_q).max()

    # (2) loose check against the full-f32 reference (bf16 cast is the only deviation)
    ref1 = jnp.concatenate([_ref_branch(s1, w, b) for (w, b) in params1], 1)
    ref2 = jnp.concatenate([_ref_branch(s2, w, b) for (w, b) in params2], 1)
    assert jnp.allclose(s1_repr, ref1, atol=5e-2, rtol=5e-2)
    assert jnp.allclose(s2_repr, ref2, atol=5e-2, rtol=5e-2)

    print("KERNEL_OK")
</pallas_src>

<mosaic_0001>
module attributes {stable_mosaic.version = 11 : i64} {
  func.func @_fused_conv_kernel(%arg0: i32, %arg1: memref<8x19x32xf32, #tpu.memory_space<vmem>>, %arg2: memref<4x32x128xbf16, #tpu.memory_space<vmem>>, %arg3: memref<1x128xf32, #tpu.memory_space<vmem>>, %arg4: memref<16x128xf32, #tpu.memory_space<vmem>>, %arg5: memref<8x128xf32, #tpu.memory_space<vmem>>) attributes {dimension_semantics = [#tpu.dimension_semantics<parallel>], iteration_bounds = array<i64: 1>, scalar_prefetch = 0 : i64, scratch_operands = 0 : i64, tpu.core_type = #tpu.core_type<tc>, window_params = [{transform_indices = @transform_0, window_bounds = array<i64: 8, 19, 32>}, {pipeline_mode = #tpu.pipeline_mode<synchronous>, transform_indices = @transform_1, window_bounds = array<i64: 4, 32, 128>}, {pipeline_mode = #tpu.pipeline_mode<synchronous>, transform_indices = @transform_2, window_bounds = array<i64: 1, 128>}, {pipeline_mode = #tpu.pipeline_mode<synchronous>, transform_indices = @transform_3, window_bounds = array<i64: 16, 128>}, {transform_indices = @transform_4, window_bounds = array<i64: 8, 128>}]} {
    %c0 = arith.constant 0 : index
    %c0_0 = arith.constant 0 : index
    %c0_1 = arith.constant 0 : index
    %0 = vector.load %arg1[%c0, %c0_0, %c0_1] : memref<8x19x32xf32, #tpu.memory_space<vmem>>, vector<8x19x32xf32>
    %1 = vector.extract_strided_slice %0 {offsets = [0, 0, 0], sizes = [8, 16, 32], strides = [1, 1, 1]} : vector<8x19x32xf32> to vector<8x16x32xf32>
    %2 = vector.shape_cast %1 : vector<8x16x32xf32> to vector<128x32xf32>
    %3 = arith.truncf %2 : vector<128x32xf32> to vector<128x32xbf16>
    %c0_2 = arith.constant 0 : index
    %c0_3 = arith.constant 0 : index
    %c0_4 = arith.constant 0 : index
    %4 = vector.load %arg2[%c0_2, %c0_3, %c0_4] : memref<4x32x128xbf16, #tpu.memory_space<vmem>>, vector<1x32x128xbf16>
    %5 = vector.shape_cast %4 : vector<1x32x128xbf16> to vector<32x128xbf16>
    %cst = arith.constant dense<0.000000e+00> : vector<128x128xf32>
    %6 = tpu.matmul %3, %5, %cst {dimension_numbers = #tpu.dot_dimension_numbers<[1], [0], [0], [1], [0, 0, 1, 1], [], []>} : vector<128x32xbf16>, vector<32x128xbf16>, vector<128x128xf32> -> vector<128x128xf32>
    %7 = vector.extract_strided_slice %0 {offsets = [0, 1, 0], sizes = [8, 16, 32], strides = [1, 1, 1]} : vector<8x19x32xf32> to vector<8x16x32xf32>
    %8 = vector.shape_cast %7 : vector<8x16x32xf32> to vector<128x32xf32>
    %9 = arith.truncf %8 : vector<128x32xf32> to vector<128x32xbf16>
    %c1 = arith.constant 1 : index
    %c0_5 = arith.constant 0 : index
    %c0_6 = arith.constant 0 : index
    %10 = vector.load %arg2[%c1, %c0_5, %c0_6] : memref<4x32x128xbf16, #tpu.memory_space<vmem>>, vector<1x32x128xbf16>
    %11 = vector.shape_cast %10 : vector<1x32x128xbf16> to vector<32x128xbf16>
    %cst_7 = arith.constant dense<0.000000e+00> : vector<128x128xf32>
    %12 = tpu.matmul %9, %11, %cst_7 {dimension_numbers = #tpu.dot_dimension_numbers<[1], [0], [0], [1], [0, 0, 1, 1], [], []>} : vector<128x32xbf16>, vector<32x128xbf16>, vector<128x128xf32> -> vector<128x128xf32>
    %13 = arith.addf %6, %12 : vector<128x128xf32>
    %14 = vector.extract_strided_slice %0 {offsets = [0, 2, 0], sizes = [8, 16, 32], strides = [1, 1, 1]} : vector<8x19x32xf32> to vector<8x16x32xf32>
    %15 = vector.shape_cast %14 : vector<8x16x32xf32> to vector<128x32xf32>
    %16 = arith.truncf %15 : vector<128x32xf32> to vector<128x32xbf16>
    %c2 = arith.constant 2 : index
    %c0_8 = arith.constant 0 : index
    %c0_9 = arith.constant 0 : index
    %17 = vector.load %arg2[%c2, %c0_8, %c0_9] : memref<4x32x128xbf16, #tpu.memory_space<vmem>>, vector<1x32x128xbf16>
    %18 = vector.shape_cast %17 : vector<1x32x128xbf16> to vector<32x128xbf16>
    %cst_10 = arith.constant dense<0.000000e+00> : vector<128x128xf32>
    %19 = tpu.matmul %16, %18, %cst_10 {dimension_numbers = #tpu.dot_dimension_numbers<[1], [0], [0], [1], [0, 0, 1, 1], [], []>} : vector<128x32xbf16>, vector<32x128xbf16>, vector<128x128xf32> -> vector<128x128xf32>
    %20 = arith.addf %13, %19 : vector<128x128xf32>
    %21 = vector.extract_strided_slice %0 {offsets = [0, 3, 0], sizes = [8, 16, 32], strides = [1, 1, 1]} : vector<8x19x32xf32> to vector<8x16x32xf32>
    %22 = vector.shape_cast %21 : vector<8x16x32xf32> to vector<128x32xf32>
    %23 = arith.truncf %22 : vector<128x32xf32> to vector<128x32xbf16>
    %c3 = arith.constant 3 : index
    %c0_11 = arith.constant 0 : index
    %c0_12 = arith.constant 0 : index
    %24 = vector.load %arg2[%c3, %c0_11, %c0_12] : memref<4x32x128xbf16, #tpu.memory_space<vmem>>, vector<1x32x128xbf16>
    %25 = vector.shape_cast %24 : vector<1x32x128xbf16> to vector<32x128xbf16>
    %cst_13 = arith.constant dense<0.000000e+00> : vector<128x128xf32>
    %26 = tpu.matmul %23, %25, %cst_13 {dimension_numbers = #tpu.dot_dimension_numbers<[1], [0], [0], [1], [0, 0, 1, 1], [], []>} : vector<128x32xbf16>, vector<32x128xbf16>, vector<128x128xf32> -> vector<128x128xf32>
    %27 = arith.addf %20, %26 : vector<128x128xf32>
    %c0_14 = arith.constant 0 : index
    %c0_15 = arith.constant 0 : index
    %28 = vector.load %arg3[%c0_14, %c0_15] : memref<1x128xf32, #tpu.memory_space<vmem>>, vector<1x128xf32>
    %29 = vector.broadcast %28 : vector<1x128xf32> to vector<128x128xf32>
    %30 = arith.addf %27, %29 : vector<128x128xf32>
    %cst_16 = arith.constant 0.000000e+00 : f32
    %31 = vector.broadcast %cst_16 : f32 to vector<128x128xf32>
    %32 = arith.maximumf %30, %31 : vector<128x128xf32>
    %33 = vector.shape_cast %32 : vector<128x128xf32> to vector<8x16x128xf32>
    %c0_17 = arith.constant 0 : index
    %c0_18 = arith.constant 0 : index
    %34 = vector.load %arg4[%c0_17, %c0_18] : memref<16x128xf32, #tpu.memory_space<vmem>>, vector<16x128xf32>
    %35 = vector.shape_cast %34 : vector<16x128xf32> to vector<1x16x128xf32>
    %36 = vector.broadcast %35 : vector<1x16x128xf32> to vector<8x16x128xf32>
    %37 = arith.mulf %33, %36 : vector<8x16x128xf32>
    %cst_19 = arith.constant dense<0xFF800000> : vector<8x128xf32>
    %38 = vector.multi_reduction <maximumf>, %37, %cst_19 [1] : vector<8x16x128xf32> to vector<8x128xf32>
    %c0_20 = arith.constant 0 : index
    %c0_21 = arith.constant 0 : index
    %39 = vector.load %arg5[%c0_20, %c0_21] : memref<8x128xf32, #tpu.memory_space<vmem>>, vector<8x128xf32>
    tpu.vector_store %arg5[%c0_20, %c0_21], %38 {strides = array<i32>} : memref<8x128xf32, #tpu.memory_space<vmem>>, vector<8x128xf32>,
    return
  }
  func.func @transform_0(%arg0: i32) -> (i32, i32, i32) {
    %c0_i32 = arith.constant 0 : i32
    %c0_i32_0 = arith.constant 0 : i32
    %c0_i32_1 = arith.constant 0 : i32
    return %arg0, %c0_i32, %c0_i32_0 : i32, i32, i32
  }
  func.func @transform_1(%arg0: i32) -> (i32, i32, i32) {
    %c0_i32 = arith.constant 0 : i32
    %c0_i32_0 = arith.constant 0 : i32
    %c0_i32_1 = arith.constant 0 : i32
    %c0_i32_2 = arith.constant 0 : i32
    return %c0_i32, %c0_i32_0, %c0_i32_1 : i32, i32, i32
  }
  func.func @transform_2(%arg0: i32) -> (i32, i32) {
    %c0_i32 = arith.constant 0 : i32
    %c0_i32_0 = arith.constant 0 : i32
    %c0_i32_1 = arith.constant 0 : i32
    return %c0_i32, %c0_i32_0 : i32, i32
  }
  func.func @transform_3(%arg0: i32) -> (i32, i32) {
    %c0_i32 = arith.constant 0 : i32
    %c0_i32_0 = arith.constant 0 : i32
    %c0_i32_1 = arith.constant 0 : i32
    return %c0_i32, %c0_i32_0 : i32, i32
  }
  func.func @transform_4(%arg0: i32) -> (i32, i32) {
    %c0_i32 = arith.constant 0 : i32
    %c0_i32_0 = arith.constant 0 : i32
    return %arg0, %c0_i32 : i32, i32
  }
}

</mosaic_0001>

<bundles_post_ra>
// kernel: tpu_custom_call.1
= control target key start
LH: loop header
LB: loop body
LE: loop exit
PB: predicated region body
PF: predicated region fallthrough
CT: control target
= control target key end

     0   :  { %vm79_vm0 = vcmask 1046528   ;;  %vm161_vm1 = vcmask 261120   ;;  %vm416_vm2 = vcmask 1045504   ;;  %s1656_s0 = inlined_call_operand.vmem [shape: f32[8,19,32], index: 0, kind: input, shape index: {}]   ;;  %s1657_s1 = inlined_call_operand.vmem [shape: bf16[4,32,128], index: 1, kind: input, shape index: {}]   ;;  %s1658_s2 = inlined_call_operand.vmem [shape: f32[1,128], index: 2, kind: input, shape index: {}]   ;;  %s1659_s3 = inlined_call_operand.vmem [shape: f32[16,128], index: 3, kind: input, shape index: {}]   ;;  %s1660_s4 = inlined_call_operand.hbm [shape: f32[8,128], index: 4, kind: output, shape index: {}]  }
   0x1   :  { %v1227_v0 = vld [vmem:[%s1657_s1 + $0x10] sm:$0xff]   ;;  %v1228_v1 = vld [vmem:[%s1657_s1 + $0x20] sm:$0xff]   ;;  %v1229_v2 = vld [vmem:[%s1657_s1 + $0x18] sm:$0xff]  }
   0x2   :  { %1098 = vmatprep.subr.bf16.mxu1 %v1227_v0  ;;  %1138 = vmatprep.subr.bf16.mxu0 %v1228_v1  ;;  %v1230_v3 = vld [vmem:[%s1657_s1 + $0x28] sm:$0xff]   ;;  %v1300_v4 = vld [vmem:[%s1656_s0] sm:$0xff]  ;;  %v1310_v6 = vld [vmem:[%s1656_s0 + $0x10] sm:$0x7] }
   0x3   :  { %1099 = vmatpush3.bf16.msra.mxu1 %v1227_v0  ;;  %1139 = vmatpush3.bf16.msra.mxu0 %v1228_v1  ;;  %v1305_v5 = vld [vmem:[%s1656_s0 + $0x8] sm:$0xff]  ;;  %v80_v7 = vrot.slane %v1300_v4, 1  ;;  %v83_v9 = vrot.slane %v1310_v6, 1  ;;  %v1318_v10 = vld [vmem:[%s1656_s0 + $0x18] sm:$0xff]  ;;  %v1323_v11 = vld [vmem:[%s1656_s0 + $0x20] sm:$0xff]  ;;  %v417_v12 = vrot.slane %v1300_v4, 2 }
   0x4   :  { %1100 = vmatprep.subr.bf16.mxu1 %v1229_v2  ;;  %1140 = vmatprep.subr.bf16.mxu0 %v1230_v3  ;;  %v81_v8 = vrot.slane %v1305_v5, 1  ;;  %v418_v13 = vrot.slane %v1305_v5, 2  ;;  %v420_v14 = vrot.slane %v1310_v6, 2  ;;  %v1331_v15 = vld [vmem:[%s1656_s0 + $0x28] sm:$0x7]  ;;  %v85_v16 = vrot.slane %v1318_v10, 1 }
   0x5   :  { %v86_v19 = vrot.slane %v1323_v11, 1  ;;  %v88_v20 = vrot.slane %v1331_v15, 1  ;;  %v1231_v24 = vld [vmem:[%s1657_s1] sm:$0xff]   ;;  %v1232_v28 = vld [vmem:[%s1657_s1 + $0x30] sm:$0xff]   ;;  %v1356_v30 = vld [vmem:[%s1656_s0 + $0x38] sm:$0xff]  ;;  %v422_v32 = vrot.slane %v1318_v10, 2 }
   0x6   :  { %v82_v17 = vsel %vm79_vm0, %v80_v7, %v81_v8  ;;  %v84_v18 = vsel %vm79_vm0, %v81_v8, %v83_v9  ;;  %v419_v22 = vsel %vm416_vm2, %v417_v12, %v418_v13  ;;  %v421_v23 = vsel %vm416_vm2, %v418_v13, %v420_v14  ;;  %v1351_v29 = vld [vmem:[%s1656_s0 + $0x30] sm:$0xff]  ;;  %v1364_v34 = vld [vmem:[%s1656_s0 + $0x40] sm:$0x7]  ;;  %v1369_v35 = vld [vmem:[%s1656_s0 + $0x48] sm:$0xff] }
   0x7   :  { %1101 = vmatpush3.bf16.msra.mxu1 %v1229_v2  ;;  %1141 = vmatpush3.bf16.msra.mxu0 %v1230_v3  ;;  %v136_v21 = vpack.c.bf16 %v84_v18, %v82_v17  ;;  %v473_v25 = vpack.c.bf16 %v421_v23, %v419_v22  ;;  %v87_v26 = vsel %vm79_vm0, %v85_v16, %v86_v19  ;;  %v423_v33 = vrot.slane %v1323_v11, 2  ;;  %v1384_v44 = vld [vmem:[%s1656_s0 + $0x50] sm:$0xff]  ;;  %v1389_v45 = vld [vmem:[%s1656_s0 + $0x58] sm:$0x7]  ;;  %v1398_v50 = vld [vmem:[%s1656_s0 + $0x60] sm:$0xff] }
   0x8   :  { %v89_v27 = vsel %vm79_vm0, %v86_v19, %v88_v20  ;;  %1118 = vmatprep.subr.bf16.mxu1 %v1231_v24  ;;  %v425_v36 = vrot.slane %v1331_v15, 2  ;;  %1158 = vmatprep.subr.bf16.mxu0 %v1232_v28  ;;  %v90_v37 = vrot.slane %v1351_v29, 1  ;;  %v91_v38 = vrot.slane %v1356_v30, 1  ;;  %v1403_v51 = vld [vmem:[%s1656_s0 + $0x68] sm:$0xff]  ;;  %v1410_v56 = vld [vmem:[%s1656_s0 + $0x70] sm:$0x7] }
   0x9   :  { %1102 = vmatprep.mubr.msk.bf16.mxu1 %vm161_vm1, %v136_v21  ;;  %v137_v31 = vpack.c.bf16 %v89_v27, %v87_v26  ;;  %1142 = vmatprep.mubr.msk.bf16.mxu0 %vm161_vm1, %v473_v25  ;;  %v93_v39 = vrot.slane %v1364_v34, 1  ;;  %v424_v40 = vsel %vm416_vm2, %v422_v32, %v423_v33  ;;  %v427_v41 = vrot.slane %v1351_v29, 2  ;;  %v1418_v61 = vld [vmem:[%s1656_s0 + $0x78] sm:$0xff]  ;;  %v1233_v62 = vld [vmem:[%s1657_s1 + $0x8] sm:$0xff]   ;;  %v1437_v12 = vld [vmem:[%s1656_s0 + $0x80] sm:$0xff] }
   0xa   :  { %v428_v42 = vrot.slane %v1356_v30, 2  ;;  %v430_v43 = vrot.slane %v1364_v34, 2  ;;  %v426_v46 = vsel %vm416_vm2, %v423_v33, %v425_v36  ;;  %v92_v47 = vsel %vm79_vm0, %v90_v37, %v91_v38  ;;  %v1442_v13 = vld [vmem:[%s1656_s0 + $0x88] sm:$0x7]  ;;  %v1234_v14 = vld [vmem:[%s1657_s1 + $0x38] sm:$0xff]  }
   0xb   :  { %1103 = vmatmul.mubr.msk.bf16.vlgmr.msra.gmra.mrb[0].mxu1 %vm161_vm1, %v137_v31  ;;  %v94_v48 = vsel %vm79_vm0, %v91_v38, %v93_v39  ;;  %v95_v49 = vrot.slane %v1369_v35, 1  ;;  %v474_v52 = vpack.c.bf16 %v426_v46, %v424_v40  ;;  %v96_v58 = vrot.slane %v1384_v44, 1 }
   0xc   :  { %1119 = vmatpush3.bf16.msra.mxu1 %v1231_v24  ;;  %v138_v53 = vpack.c.bf16 %v94_v48, %v92_v47  ;;  %v429_v54 = vsel %vm416_vm2, %v427_v41, %v428_v42  ;;  %v431_v55 = vsel %vm416_vm2, %v428_v42, %v430_v43  ;;  %v98_v59 = vrot.slane %v1389_v45, 1 }
   0xd   :  { %v475_v57 = vpack.c.bf16 %v431_v55, %v429_v54  ;;  %v432_v60 = vrot.slane %v1369_v35, 2  ;;  %1143 = vmatmul.mubr.msk.bf16.vlgmr.msra.gmra.mrb[0].mxu0 %vm161_vm1, %v474_v52  ;;  %v433_v63 = vrot.slane %v1384_v44, 2  ;;  %v435_v0 = vrot.slane %v1389_v45, 2  ;;  %1120 = vmatprep.subr.bf16.mxu1 %v1233_v62 }
   0xe   :  { %1106 = vmatprep.mubr.msk.bf16.mxu1 %vm161_vm1, %v138_v53  ;;  %v100_v1 = vrot.slane %v1398_v50, 1  ;;  %v101_v2 = vrot.slane %v1403_v51, 1  ;;  %1159 = vmatpush3.bf16.msra.mxu0 %v1232_v28  ;;  %v97_v3 = vsel %vm79_vm0, %v95_v49, %v96_v58  ;;  %v99_v7 = vsel %vm79_vm0, %v96_v58, %v98_v59 }
   0xf   :  { %1146 = vmatprep.mubr.msk.bf16.mxu0 %vm161_vm1, %v475_v57  ;;  %v103_v8 = vrot.slane %v1410_v56, 1  ;;  %v437_v9 = vrot.slane %v1398_v50, 2  ;;  %v139_v16 = vpack.c.bf16 %v99_v7, %v97_v3  ;;  %v434_v17 = vsel %vm416_vm2, %v432_v60, %v433_v63  ;;  %1160 = vmatprep.subr.bf16.mxu0 %v1234_v14 }
  0x10   :  { %v436_v18 = vsel %vm416_vm2, %v433_v63, %v435_v0  ;;  %v102_v19 = vsel %vm79_vm0, %v100_v1, %v101_v2  ;;  %v438_v22 = vrot.slane %v1403_v51, 2  ;;  %v440_v23 = vrot.slane %v1410_v56, 2  ;;  %1121 = vmatpush3.bf16.msra.mxu1 %v1233_v62 }
  0x11   :  { %v476_v20 = vpack.c.bf16 %v436_v18, %v434_v17  ;;  %v104_v21 = vsel %vm79_vm0, %v101_v2, %v103_v8 }
  0x12   :  { %9 = vsyncpa [#allocation3], 0  ;;  %v140_v24 = vpack.c.bf16 %v104_v21, %v102_v19  ;;  %v105_v25 = vrot.slane %v1418_v61, 1  ;;  %v106_v26 = vrot.slane %v1437_v12, 1  ;;  %v108_v27 = vrot.slane %v1442_v13, 1  ;;  %v1460_v28 = vld [vmem:[%s1656_s0 + $0x90] sm:$0xff]  ;;  %1161 = vmatpush3.bf16.msra.mxu0 %v1234_v14 }
  0x13   :  { %1107 = vmatmul.mubr.msk.bf16.gmra.mrb[4].mxu1 %vm161_vm1, %v139_v16  ;;  %v1465_v31 = vld [vmem:[%s1656_s0 + $0x98] sm:$0xff]  ;;  %v439_v32 = vsel %vm416_vm2, %v437_v9, %v438_v22  ;;  %v441_v33 = vsel %vm416_vm2, %v438_v22, %v440_v23  ;;  %v442_v36 = vrot.slane %v1418_v61, 2  ;;  %v443_v37 = vrot.slane %v1437_v12, 2  ;;  %v1474_v38 = vld [vmem:[%s1656_s0 + $0xa0] sm:$0x7]  ;;  %v1483_v43 = vld [vmem:[%s1656_s0 + $0xa8] sm:$0xff] }
  0x14   :  { %1110 = vmatprep.mubr.msk.bf16.mxu1 %vm161_vm1, %v140_v24  ;;  %v477_v39 = vpack.c.bf16 %v441_v33, %v439_v32  ;;  %v107_v40 = vsel %vm79_vm0, %v105_v25, %v106_v26  ;;  %v109_v41 = vsel %vm79_vm0, %v106_v26, %v108_v27  ;;  %v445_v42 = vrot.slane %v1442_v13, 2  ;;  %v1490_v49 = vld [vmem:[%s1656_s0 + $0xb0] sm:$0xff]  ;;  %v1495_v52 = vld [vmem:[%s1656_s0 + $0xb8] sm:$0x7] }
  0x15   :  { %v141_v46 = vpack.c.bf16 %v109_v41, %v107_v40  ;;  %v110_v47 = vrot.slane %v1460_v28, 1  ;;  %v111_v48 = vrot.slane %v1465_v31, 1  ;;  %1147 = vmatmul.mubr.msk.bf16.gmra.mrb[4].mxu0 %vm161_vm1, %v476_v20  ;;  %v444_v53 = vsel %vm416_vm2, %v442_v36, %v443_v37 }
  0x16   :  { %v113_v54 = vrot.slane %v1474_v38, 1  ;;  %v447_v55 = vrot.slane %v1460_v28, 2  ;;  %v448_v57 = vrot.slane %v1465_v31, 2  ;;  %1150 = vmatprep.mubr.msk.bf16.mxu0 %vm161_vm1, %v477_v39  ;;  %v446_v58 = vsel %vm416_vm2, %v443_v37, %v445_v42 }
  0x17   :  { %v112_v59 = vsel %vm79_vm0, %v110_v47, %v111_v48  ;;  %v450_v60 = vrot.slane %v1474_v38, 2  ;;  %v115_v62 = vrot.slane %v1483_v43, 1  ;;  %v116_v1 = vrot.slane %v1490_v49, 1 }
  0x18   :  { %v114_v63 = vsel %vm79_vm0, %v111_v48, %v113_v54  ;;  %v449_v0 = vsel %vm416_vm2, %v447_v55, %v448_v57  ;;  %v118_v2 = vrot.slane %v1495_v52, 1  ;;  %v478_v8 = vpack.c.bf16 %v446_v58, %v444_v53 }
  0x19   :  { %v142_v3 = vpack.c.bf16 %v114_v63, %v112_v59  ;;  %v451_v7 = vsel %vm416_vm2, %v448_v57, %v450_v60  ;;  %v452_v9 = vrot.slane %v1483_v43, 2  ;;  %v453_v14 = vrot.slane %v1490_v49, 2 }
  0x1a   :  { %v479_v16 = vpack.c.bf16 %v451_v7, %v449_v0  ;;  %v117_v17 = vsel %vm79_vm0, %v115_v62, %v116_v1  ;;  %v119_v18 = vsel %vm79_vm0, %v116_v1, %v118_v2  ;;  %v455_v19 = vrot.slane %v1495_v52, 2 }
  0x1b   :  { %1111 = vmatmul.mubr.msk.bf16.gmra.mrb[8].mxu1 %vm161_vm1, %v141_v46  ;;  %v639_v20 = vrot.slane %v1310_v6, 3  ;;  %v636_v21 = vrot.slane %v1300_v4, 3  ;;  %v637_v22 = vrot.slane %v1305_v5, 3  ;;  %vm635_vm3 = vcmask 1044480  }
  0x1c   :  { %1114 = vmatprep.mubr.msk.bf16.mxu1 %vm161_vm1, %v142_v3  ;;  %v143_v23 = vpack.c.bf16 %v119_v18, %v117_v17  ;;  %v454_v24 = vsel %vm416_vm2, %v452_v9, %v453_v14  ;;  %v456_v25 = vsel %vm416_vm2, %v453_v14, %v455_v19  ;;  %v43_v26 = vpack.c.bf16 %v1305_v5, %v1300_v4 }
  0x1d   :  { %1151 = vmatmul.mubr.msk.bf16.gmra.mrb[8].mxu0 %vm161_vm1, %v478_v8  ;;  %v638_v27 = vsel %vm635_vm3, %v636_v21, %v637_v22  ;;  %v640_v6 = vsel %vm635_vm3, %v637_v22, %v639_v20  ;;  %v480_v32 = vpack.c.bf16 %v456_v25, %v454_v24  ;;  %v641_v33 = vrot.slane %v1318_v10, 3 }
  0x1e   :  { %1154 = vmatprep.mubr.msk.bf16.mxu0 %vm161_vm1, %v479_v16  ;;  %v642_v36 = vrot.slane %v1323_v11, 3  ;;  %v644_v37 = vrot.slane %v1331_v15, 3  ;;  %v692_v39 = vpack.c.bf16 %v640_v6, %v638_v27  ;;  %v646_v40 = vrot.slane %v1351_v29, 3 }
  0x1f   :  { %v647_v4 = vrot.slane %v1356_v30, 3  ;;  %v649_v5 = vrot.slane %v1364_v34, 3  ;;  %v44_v41 = vpack.c.bf16 %v1323_v11, %v1318_v10  ;;  %v45_v46 = vpack.c.bf16 %v1356_v30, %v1351_v29 }
  0x20   :  { %v643_v42 = vsel %vm635_vm3, %v641_v33, %v642_v36  ;;  %v645_v15 = vsel %vm635_vm3, %v642_v36, %v644_v37  ;;  %v651_v10 = vrot.slane %v1369_v35, 3  ;;  %v652_v11 = vrot.slane %v1384_v44, 3 }
  0x21   :  { %v648_v47 = vsel %vm635_vm3, %v646_v40, %v647_v4  ;;  %v650_v48 = vsel %vm635_vm3, %v647_v4, %v649_v5  ;;  %v693_v34 = vpack.c.bf16 %v645_v15, %v643_v42  ;;  %v654_v54 = vrot.slane %v1389_v45, 3  ;;  %v1608_v4 = vld [vmem:[%s1659_s3] sm:$0xff] }
  0x22   :  { %v694_v53 = vpack.c.bf16 %v650_v48, %v648_v47  ;;  %v656_v55 = vrot.slane %v1398_v50, 3  ;;  %v657_v29 = vrot.slane %v1403_v51, 3  ;;  %v659_v30 = vrot.slane %v1410_v56, 3 }
  0x23   :  { %1115 = vmatmul.mubr.msk.bf16.gmra.mrb[12].mxu1 %vm161_vm1, %v143_v23  ;;  %v46_v57 = vpack.c.bf16 %v1384_v44, %v1369_v35  ;;  %v653_v58 = vsel %vm635_vm3, %v651_v10, %v652_v11  ;;  %v655_v59 = vsel %vm635_vm3, %v652_v11, %v654_v54  ;;  %v47_v45 = vpack.c.bf16 %v1403_v51, %v1398_v50 }
  0x24   :  { %1122 = vmatprep.mubr.msk.bf16.mxu1 %vm161_vm1, %v43_v26  ;;  %v658_v60 = vsel %vm635_vm3, %v656_v55, %v657_v29  ;;  %v660_v62 = vsel %vm635_vm3, %v657_v29, %v659_v30  ;;  %v695_v56 = vpack.c.bf16 %v655_v59, %v653_v58  ;;  %v661_v35 = vrot.slane %v1418_v61, 3 }
  0x25   :  { %1155 = vmatmul.mubr.msk.bf16.gmra.mrb[12].mxu0 %vm161_vm1, %v480_v32  ;;  %v696_v63 = vpack.c.bf16 %v660_v62, %v658_v60  ;;  %v662_v44 = vrot.slane %v1437_v12, 3  ;;  %v664_v0 = vrot.slane %v1442_v13, 3  ;;  %v666_v1 = vrot.slane %v1460_v28, 3 }
  0x26   :  { %1162 = vmatprep.mubr.msk.bf16.mxu0 %vm161_vm1, %v692_v39  ;;  %v667_v50 = vrot.slane %v1465_v31, 3  ;;  %v669_v51 = vrot.slane %v1474_v38, 3  ;;  %v48_v2 = vpack.c.bf16 %v1437_v12, %v1418_v61  ;;  %v49_v13 = vpack.c.bf16 %v1465_v31, %v1460_v28 }
  0x27   :  { %v663_v3 = vsel %vm635_vm3, %v661_v35, %v662_v44  ;;  %v665_v7 = vsel %vm635_vm3, %v662_v44, %v664_v0  ;;  %v671_v61 = vrot.slane %v1483_v43, 3  ;;  %v672_v12 = vrot.slane %v1490_v49, 3 }
  0x28   :  { %v668_v8 = vsel %vm635_vm3, %v666_v1, %v667_v50  ;;  %v670_v9 = vsel %vm635_vm3, %v667_v50, %v669_v51  ;;  %v697_v38 = vpack.c.bf16 %v665_v7, %v663_v3  ;;  %v674_v16 = vrot.slane %v1495_v52, 3 }
  0x29   :  { %v698_v14 = vpack.c.bf16 %v670_v9, %v668_v8  ;;  %v50_v28 = vpack.c.bf16 %v1490_v49, %v1483_v43  ;;  %v673_v31 = vsel %vm635_vm3, %v671_v61, %v672_v12  ;;  %v1600_v43 = vld [vmem:[%s1658_s2] ss:$0 sm:$0xff]  ;;  %vm975_vm4 = vcmask 1041409  }
  0x2a   :  { %v675_v17 = vsel %vm635_vm3, %v672_v12, %v674_v16  ;;  %vm977_vm5 = vcmask 1042434   ;;  %vm979_vm6 = vcmask 1043459   ;;  %vm981_vm7 = vcmask 1044484  }
  0x2b   :  { %1123 = vmatmul.mubr.msk.bf16.vlgmr.msra.gmra.mrb[0].mxu1 %vm161_vm1, %v44_v41  ;;  %v699_v18 = vpack.c.bf16 %v675_v17, %v673_v31  ;;  %v1613_v41 = vld [vmem:[%s1659_s3 + $0x8] sm:$0xff]  ;;  %vm983_vm8 = vcmask 1045509   ;;  %vm985_vm9 = vcmask 1046534   ;;  %s1259_s3 = smov [#allocation2]   ;;  %vm987_vm10 = vcmask 1047559  }
  0x2c   :  { %1126 = vmatprep.mubr.msk.bf16.mxu1 %vm161_vm1, %v45_v46  ;;  %s997_s30 = sshll.u32 %s1259_s3, 4  ;;  %s998_s30 = int_to_ptr.vmem [resolvable:$true] %s997_s30 }
  0x2d   :  { %1163 = vmatmul.mubr.msk.bf16.vlgmr.msra.gmra.mrb[0].mxu0 %vm161_vm1, %v693_v34  ;;  %s1235_s5 = scalar_lea.vmem %s998_s30, 128  ;;  %p1240_p1 = scmp.lt.s32.totalorder %s998_s30, %s998_s30 }
  0x2e   :  { %1166 = vmatprep.mubr.msk.bf16.mxu0 %vm161_vm1, %v694_v53  ;;  %p1236_p0 = scmp.ne.s32.totalorder %s998_s30, %s1235_s5  ;;  %p1241_p2 = scmp.lt.s32.totalorder %s1235_s5, %s1235_s5 }
  0x30   :  { %p1242_p3 = por %p1241_p2, %p1240_p1 }
  0x32   :  { %p1243_p4 = pnand %p1242_p3, %p1236_p0 }
  0x33   :  { %1127 = vmatmul.mubr.msk.bf16.gmra.mrb[4].mxu1 %vm161_vm1, %v46_v57 }
  0x34   :  { %1130 = vmatprep.mubr.msk.bf16.mxu1 %vm161_vm1, %v47_v45 }
  0x35   :  { %1167 = vmatmul.mubr.msk.bf16.gmra.mrb[4].mxu0 %vm161_vm1, %v695_v56 }
  0x36   :  { %1170 = vmatprep.mubr.msk.bf16.mxu0 %vm161_vm1, %v696_v63 }
  0x3b   :  { %1131 = vmatmul.mubr.msk.bf16.gmra.mrb[8].mxu1 %vm161_vm1, %v48_v2 }
  0x3c   :  { %1134 = vmatprep.mubr.msk.bf16.mxu1 %vm161_vm1, %v49_v13 }
  0x3d   :  { %1171 = vmatmul.mubr.msk.bf16.gmra.mrb[8].mxu0 %vm161_vm1, %v697_v38 }
  0x3e   :  { %1174 = vmatprep.mubr.msk.bf16.mxu0 %vm161_vm1, %v698_v14 }
  0x43   :  { %1135 = vmatmul.mubr.msk.bf16.gmra.mrb[12].mxu1 %vm161_vm1, %v50_v28 }
  0x45   :  { %1175 = vmatmul.mubr.msk.bf16.gmra.mrb[12].mxu0 %vm161_vm1, %v699_v18 }
  0xfe   :  { %v1124_v19 = vpop.f32.mrb[0].mxu1 }
  0xff   :  { %v353_v20 = vpop.f32.mrb[1].mxu1 }
 0x100   :  { %v1125_v21 = vpop.f32.mrb[2].mxu1  ;;  %v1164_v22 = vpop.f32.mrb[0].mxu0 }
 0x101   :  { %v356_v52 = vpop.f32.mrb[3].mxu1  ;;  %v1178_v49 = vadd.f32 %v1164_v22, %v1124_v19  ;;  %v775_v23 = vpop.f32.mrb[1].mxu0 }
 0x102   :  { %v1179_v24 = vadd.f32 %v775_v23, %v353_v20  ;;  %v1165_v25 = vpop.f32.mrb[2].mxu0 }
 0x103   :  { %v863_v26 = vadd.f32 %v1178_v49, %v1600_v43  ;;  %v1180_v27 = vadd.f32 %v1165_v25, %v1125_v21  ;;  %v778_v6 = vpop.f32.mrb[3].mxu0 }
 0x104   :  { %v861_v32 = vadd.f32 %v1179_v24, %v1600_v43  ;;  %v1181_v33 = vadd.f32 %v778_v6, %v356_v52 }
 0x105   :  { %v879_v37 = vmax.f32 %v863_v26, 0.0  ;;  %v864_v39 = vadd.f32 %v1180_v27, %v1600_v43 }
 0x106   :  { %v1128_v36 = vpop.f32.mrb[4].mxu1  ;;  %v877_v5 = vmax.f32 %v861_v32, 0.0  ;;  %v862_v42 = vadd.f32 %v1181_v33, %v1600_v43 }
 0x107   :  { %v369_v40 = vpop.f32.mrb[5].mxu1  ;;  %v880_v46 = vmax.f32 %v864_v39, 0.0  ;;  %v897_v53 = vmul.f32 %v1608_v4, %v879_v37 }
 0x108   :  { %v1129_v15 = vpop.f32.mrb[6].mxu1  ;;  %v878_v48 = vmax.f32 %v862_v42, 0.0  ;;  %v1168_v34 = vpop.f32.mrb[4].mxu0  ;;  %v895_v55 = vmul.f32 %v1608_v4, %v877_v5 }
 0x109   :  { %v372_v47 = vpop.f32.mrb[7].mxu1  ;;  %v898_v10 = vmul.f32 %v1613_v41, %v880_v46  ;;  %v1182_v11 = vadd.f32 %v1168_v34, %v1128_v36  ;;  %v791_v54 = vpop.f32.mrb[5].mxu0 }
 0x10a   :  { %v896_v29 = vmul.f32 %v1613_v41, %v878_v48  ;;  %v1183_v30 = vadd.f32 %v791_v54, %v369_v40  ;;  %v1169_v57 = vpop.f32.mrb[6].mxu0 }
 0x10b   :  { %v918_v58 = vmax.f32 %v897_v53, %v898_v10  ;;  %v867_v59 = vadd.f32 %v1182_v11, %v1600_v43  ;;  %v1184_v45 = vadd.f32 %v1169_v57, %v1129_v15  ;;  %v794_v60 = vpop.f32.mrb[7].mxu0 }
 0x10c   :  { %v911_v62 = vmax.f32 %v895_v55, %v896_v29  ;;  %v865_v56 = vadd.f32 %v1183_v30, %v1600_v43  ;;  %v1185_v63 = vadd.f32 %v794_v60, %v372_v47 }
 0x10d   :  { %v919_v44 = vrot.slane %v918_v58, 4  ;;  %v883_v0 = vmax.f32 %v867_v59, 0.0  ;;  %v868_v1 = vadd.f32 %v1184_v45, %v1600_v43 }
 0x10e   :  { %v1132_v35 = vpop.f32.mrb[8].mxu1  ;;  %v912_v51 = vrot.slane %v911_v62, 4  ;;  %v881_v2 = vmax.f32 %v865_v56, 0.0  ;;  %v866_v3 = vadd.f32 %v1185_v63, %v1600_v43 }
 0x10f   :  { %v385_v50 = vpop.f32.mrb[9].mxu1  ;;  %v920_v13 = vmax.f32 %v918_v58, %v919_v44  ;;  %v884_v8 = vmax.f32 %v868_v1, 0.0  ;;  %v901_v16 = vmul.f32 %v1608_v4, %v883_v0 }
 0x110   :  { %v1133_v7 = vpop.f32.mrb[10].mxu1  ;;  %v913_v38 = vmax.f32 %v911_v62, %v912_v51  ;;  %v882_v14 = vmax.f32 %v866_v3, 0.0  ;;  %v1172_v61 = vpop.f32.mrb[8].mxu0  ;;  %v899_v19 = vmul.f32 %v1608_v4, %v881_v2 }
 0x111   :  { %v388_v9 = vpop.f32.mrb[11].mxu1  ;;  %v921_v12 = vrot.slane %v920_v13, 2  ;;  %v902_v28 = vmul.f32 %v1613_v41, %v884_v8  ;;  %v1186_v31 = vadd.f32 %v1172_v61, %v1132_v35  ;;  %v807_v17 = vpop.f32.mrb[9].mxu0 }
 0x112   :  { %v914_v18 = vrot.slane %v913_v38, 2  ;;  %v900_v20 = vmul.f32 %v1613_v41, %v882_v14  ;;  %v1187_v21 = vadd.f32 %v807_v17, %v385_v50  ;;  %v1173_v52 = vpop.f32.mrb[10].mxu0 }
 0x113   :  { %v922_v22 = vmax.f32 %v920_v13, %v921_v12  ;;  %v932_v49 = vmax.f32 %v901_v16, %v902_v28  ;;  %v871_v23 = vadd.f32 %v1186_v31, %v1600_v43  ;;  %v1188_v24 = vadd.f32 %v1173_v52, %v1133_v7  ;;  %v810_v25 = vpop.f32.mrb[11].mxu0 }
 0x114   :  { %v915_v26 = vmax.f32 %v913_v38, %v914_v18  ;;  %v925_v27 = vmax.f32 %v899_v19, %v900_v20  ;;  %v869_v6 = vadd.f32 %v1187_v21, %v1600_v43  ;;  %v1189_v32 = vadd.f32 %v810_v25, %v388_v9 }
 0x115   :  { %v923_v36 = vrot.slane %v922_v22, 1  ;;  %v933_v37 = vrot.slane %v932_v49, 4  ;;  %v887_v39 = vmax.f32 %v871_v23, 0.0  ;;  %v872_v40 = vadd.f32 %v1188_v24, %v1600_v43 }
 0x116   :  { %v1136_v33 = vpop.f32.mrb[12].mxu1  ;;  %v916_v42 = vrot.slane %v915_v26, 1  ;;  %v926_v15 = vrot.slane %v925_v27, 4  ;;  %v885_v46 = vmax.f32 %v869_v6, 0.0  ;;  %v870_v47 = vadd.f32 %v1189_v32, %v1600_v43 }
 0x117   :  { %v401_v5 = vpop.f32.mrb[13].mxu1  ;;  %v924_v34 = vmax.f32 %v922_v22, %v923_v36  ;;  %v934_v53 = vmax.f32 %v932_v49, %v933_v37  ;;  %v888_v10 = vmax.f32 %v872_v40, 0.0  ;;  %v905_v29 = vmul.f32 %v1608_v4, %v887_v39 }
 0x118   :  { %v1137_v48 = vpop.f32.mrb[14].mxu1  ;;  %v917_v54 = vmax.f32 %v915_v26, %v916_v42  ;;  %v927_v55 = vmax.f32 %v925_v27, %v926_v15  ;;  %v886_v30 = vmax.f32 %v870_v47, 0.0  ;;  %v1176_v57 = vpop.f32.mrb[12].mxu0  ;;  %v903_v59 = vmul.f32 %v1608_v4, %v885_v46 }
 0x119   :  { %v404_v11 = vpop.f32.mrb[15].mxu1  ;;  %v935_v58 = vrot.slane %v934_v53, 2  ;;  %v906_v45 = vmul.f32 %v1613_v41, %v888_v10  ;;  %v1190_v60 = vadd.f32 %v1176_v57, %v1136_v33  ;;  %v823_v62 = vpop.f32.mrb[13].mxu0 }
 0x11a   :  { %v928_v56 = vrot.slane %v927_v55, 2  ;;  %v904_v63 = vmul.f32 %v1613_v41, %v886_v30  ;;  %v1191_v35 = vadd.f32 %v823_v62, %v401_v5  ;;  %v1177_v44 = vpop.f32.mrb[14].mxu0  ;;  %v976_v0 = vsel %vm975_vm4, %v924_v34, %v917_v54 }
 0x11b   :  { %v936_v1 = vmax.f32 %v934_v53, %v935_v58  ;;  %v946_v50 = vmax.f32 %v905_v29, %v906_v45  ;;  %v875_v51 = vadd.f32 %v1190_v60, %v1600_v43  ;;  %v1192_v2 = vadd.f32 %v1177_v44, %v1137_v48  ;;  %v826_v3 = vpop.f32.mrb[15].mxu0 }
 0x11c   :  { %v929_v7 = vmax.f32 %v927_v55, %v928_v56  ;;  %v939_v13 = vmax.f32 %v903_v59, %v904_v63  ;;  %v873_v8 = vadd.f32 %v1191_v35, %v1600_v43  ;;  %v1193_v9 = vadd.f32 %v826_v3, %v404_v11 }
 0x11d   :  { %v937_v38 = vrot.slane %v936_v1, 1  ;;  %v947_v14 = vrot.slane %v946_v50, 4  ;;  %v891_v61 = vmax.f32 %v875_v51, 0.0  ;;  %v876_v12 = vadd.f32 %v1192_v2, %v1600_v43 }
 0x11e   :  { %v930_v16 = vrot.slane %v929_v7, 1  ;;  %v940_v28 = vrot.slane %v939_v13, 4  ;;  %v889_v31 = vmax.f32 %v873_v8, 0.0  ;;  %v874_v17 = vadd.f32 %v1193_v9, %v1600_v43 }
 0x11f   :  { %v948_v18 = vmax.f32 %v946_v50, %v947_v14  ;;  %v892_v19 = vmax.f32 %v876_v12, 0.0  ;;  %v938_v22 = vmax.f32 %v936_v1, %v937_v38  ;;  %v909_v23 = vmul.f32 %v1608_v4, %v891_v61 }
 0x120   :  { %v931_v20 = vmax.f32 %v929_v7, %v930_v16  ;;  %v941_v21 = vmax.f32 %v939_v13, %v940_v28  ;;  %v890_v52 = vmax.f32 %v874_v17, 0.0  ;;  %v907_v26 = vmul.f32 %v1608_v4, %v889_v31 }
 0x121   :  { %v949_v49 = vrot.slane %v948_v18, 2  ;;  %v910_v24 = vmul.f32 %v1613_v41, %v892_v19 }
 0x122   :  { %v942_v25 = vrot.slane %v941_v21, 2  ;;  %v908_v27 = vmul.f32 %v1613_v41, %v890_v52  ;;  %v978_v6 = vsel %vm977_vm5, %v931_v20, %v976_v0 }
 0x123   :  { %v950_v43 = vmax.f32 %v948_v18, %v949_v49  ;;  %v960_v32 = vmax.f32 %v909_v23, %v910_v24  ;;  %v980_v33 = vsel %vm979_vm6, %v938_v22, %v978_v6 }
 0x124   :  { %v943_v36 = vmax.f32 %v941_v21, %v942_v25  ;;  %v953_v37 = vmax.f32 %v907_v26, %v908_v27 }
 0x125   :  { %v961_v39 = vrot.slane %v960_v32, 4  ;;  %v951_v40 = vrot.slane %v950_v43, 1 }
 0x126   :  { %v944_v5 = vrot.slane %v943_v36, 1  ;;  %v954_v42 = vrot.slane %v953_v37, 4 }
 0x127   :  { %v962_v15 = vmax.f32 %v960_v32, %v961_v39  ;;  %v952_v48 = vmax.f32 %v950_v43, %v951_v40 }
 0x128   :  { %v945_v46 = vmax.f32 %v943_v36, %v944_v5  ;;  %v955_v47 = vmax.f32 %v953_v37, %v954_v42 }
 0x129   :  { %v963_v34 = vrot.slane %v962_v15, 2 }
 0x12a   :  { %v956_v4 = vrot.slane %v955_v47, 2  ;;  %v982_v53 = vsel %vm981_vm7, %v945_v46, %v980_v33 }
 0x12b   :  { %v964_v41 = vmax.f32 %v962_v15, %v963_v34  ;;  %v984_v10 = vsel %vm983_vm8, %v952_v48, %v982_v53 }
 0x12c   :  { %v957_v11 = vmax.f32 %v955_v47, %v956_v4 }
 0x12d   :  { %v965_v54 = vrot.slane %v964_v41, 1 }
 0x12e   :  { %v958_v55 = vrot.slane %v957_v11, 1 }
 0x12f   :  { %v966_v30 = vmax.f32 %v964_v41, %v965_v54 }
 0x130   :  { %v959_v29 = vmax.f32 %v957_v11, %v958_v55 }
 0x132   :  { %v986_v57 = vsel %vm985_vm9, %v959_v29, %v984_v10 }
 0x133   :  { %v988_v58 = vsel %vm987_vm10, %v966_v30, %v986_v57 }
 0x134   :  { %990 = vst [vmem:[#allocation2] sm:$0xff] %v988_v58 }
 0x135   :  { %1246 = shalt.err (!%p1243_p4)
}
 0x136   :  { %s1247_s8 = scalar_lea.hbm %s1660_s4, 128 }
 0x137   :  { %p1248_p5 = scmp.ne.s32.totalorder %s1660_s4, %s1247_s8  ;;  %p1251_p6 = scmp.lt.u32.totalorder %s1247_s8, %s1660_s4 }
 0x139   :  { %p1253_p7 = pnand %p1251_p6, %p1248_p5 }
 0x13b   :  { %1256 = shalt.err (!%p1253_p7)
}
 0x13c   :  { %1000 = dma.vmem_to_hbm [thread:$0]  %s998_s30, 128, %s1660_s4, [#allocation3]  }
 0x13d   :  { %1257 = dma.done.wait [#allocation3], 128  }
 0x13e   :  { %1258 = vsyncadd [#allocation3], 4294967168 }
 0x13f   :  { %1004 = vsyncpa [#allocation3], 1 }

</bundles_post_ra>
